<compile_context>
chip_gen: v6e
topology: v6e:2x2x1
jax: 0.10.0
libtpu: 0.0.40
codegen_flags: <defaults>
</compile_context>

<pallas_src>
from functools import partial

import jax
import jax.numpy as jnp
import numpy as np
from jax.experimental import pallas as pl
from jax.experimental.pallas import tpu as pltpu


def bottleneck_kernel(x_ref, w1_ref, b1_ref, w2_ref, b2_ref, w3_ref, b3_ref,
                      mask_ref, o_ref, patch_ref, *, W):
    """One block of images (concatenated along lanes) per grid step.

    Layout: (channels, L) with L = block_n * H * W in lanes.
    """
    L = x_ref.shape[1]
    P = w1_ref.shape[0]                                   # planes

    # ---- conv1 (1x1) + folded bn1 + relu ----------------------------------
    # Read x fresh (bf16 for the MXU); do NOT keep an f32 copy live across all
    # three matmuls — the residual re-reads the resident VMEM tile later.
    out1 = jnp.dot(w1_ref[...], x_ref[...].astype(jnp.bfloat16),
                   preferred_element_type=jnp.float32)
    out1 = jnp.maximum(out1 + b1_ref[...], 0.0)           # (P, L) f32

    # ---- conv2 (3x3, stride=1, pad=1) as ONE K=9P matmul --------------------
    # im2col: 9 spatially shifted copies of out1 stacked along K.  A shift of
    # (dy-1, dx-1) is a lane rotation of the flattened spatial axis; the
    # (9, L) boundary mask zeroes out-of-image (and cross-image / wrap-around)
    # positions.  Mask multiply + bf16 cast are fused into each tap store so
    # the (9P, L) patch is materialized exactly once, directly in bf16.
    # NOTE: every tap block is fully overwritten every grid step (required so
    # stale scratch from a previous image can never leak into conv2).
    for dy in range(3):
        for dx in range(3):
            tap = dy * 3 + dx
            s = (dy - 1) * W + (dx - 1)                   # flattened spatial shift
            if s == 0:
                tap_val = out1                            # center tap: mask all-ones
            else:
                shifted = pltpu.roll(out1, shift=(-s) % L, axis=1)
                tap_val = shifted * mask_ref[tap:tap + 1, :]
            patch_ref[tap * P:(tap + 1) * P, :] = tap_val.astype(jnp.bfloat16)

    out2 = jnp.dot(w2_ref[...], patch_ref[...],
                   preferred_element_type=jnp.float32)
    out2 = jnp.maximum(out2 + b2_ref[...], 0.0)           # (P, L) f32

    # ---- conv3 (1x1) + folded bn3 -------------------------------------------
    out3 = jnp.dot(w3_ref[...], out2.astype(jnp.bfloat16),
                   preferred_element_type=jnp.float32) + b3_ref[...]

    # ---- residual add + relu (downsample=None => Cin == Cout) ---------------
    o_ref[...] = jnp.maximum(out3 + x_ref[...].astype(jnp.float32),
                             0.0).astype(o_ref.dtype)


def _pick_block_n(N, HW, min_lanes=256):
    """Smallest divisor of N whose lane width (Nb*HW) is >= min_lanes and a
    multiple of 128; falls back to Nb = N (full lane extent is always legal)."""
    for d in range(1, N + 1):
        if N % d == 0 and d * HW >= min_lanes and (d * HW) % 128 == 0:
            return d
    return N


def _vmem_limit_bytes(cin, cout, planes, lanes, x_bytes, o_bytes):
    """Working-set estimate per grid step, clamped to a safe scoped limit."""
    working = (2 * cin * lanes * x_bytes            # x tile, double-buffered
               + 2 * cout * lanes * o_bytes         # out tile, double-buffered
               + 9 * planes * lanes * 2             # bf16 im2col patch scratch
               + 9 * lanes * 4                      # boundary mask
               + 3 * max(planes, cout) * lanes * 4  # f32 out1/out2/out3 temporaries
               + 2 * (planes * cin + planes * 9 * planes + cout * planes) * 2
               + (2 * planes + cout) * 4)
    limit = int(working * 1.25) + (2 << 20)
    # >= 32 MiB (defaults are 16/32 MiB), < v7x's 64 MiB/TC physical VMEM.
    return max(32 << 20, min(limit, 56 << 20))


def bottleneck_forward(x_nchw, params, *, block_n=None, out_dtype=jnp.bfloat16):
    """x_nchw: (N, Cin, H, W). Returns (N, planes*4, H, W) in `out_dtype`."""
    N, Cin, H, W = x_nchw.shape
    HW = H * W
    w1, s1, b1, w2, s2, b2, w3, s3, b3 = params
    P = w1.shape[1]
    Cout = w3.shape[1]
    assert Cin == Cout, "stride=1 / downsample=None requires inplanes == planes*4"

    if block_n is None:
        block_n = _pick_block_n(N, HW)
    assert N % block_n == 0
    L = block_n * HW
    grid = (N // block_n,)

    # Fold BN scale into conv weights (per output channel), transpose to the
    # channels-first matmul layout, cast to bf16 for the MXU.
    w1t = (w1 * s1.reshape(1, P)).T.astype(jnp.bfloat16)            # (P, Cin)
    w2m = (w2 * s2.reshape(1, 1, 1, P)).reshape(9 * P, P)           # (9P, P) tap-major
    w2t = w2m.T.astype(jnp.bfloat16)                                # (P, 9P)
    w3t = (w3 * s3.reshape(1, Cout)).T.astype(jnp.bfloat16)         # (Cout, P)
    b1c = b1.reshape(P, 1).astype(jnp.float32)
    b2c = b2.reshape(P, 1).astype(jnp.float32)
    b3c = b3.reshape(Cout, 1).astype(jnp.float32)

    # (9, L) boundary mask: 1.0 where the shifted source pixel lies inside the
    # same image, 0.0 in the zero-padding halo.  Because the only invalid
    # positions are image-edge pixels, this also kills cross-image bleed and
    # wrap-around when several images share the lane axis.
    yy = np.repeat(np.arange(H), W)
    xx = np.tile(np.arange(W), H)
    rows = []
    for dy in range(3):
        for dx in range(3):
            valid = ((yy + dy - 1 >= 0) & (yy + dy - 1 < H)
                     & (xx + dx - 1 >= 0) & (xx + dx - 1 < W))
            rows.append(np.tile(valid.astype(np.float32), block_n))
    mask = jnp.asarray(np.stack(rows, axis=0))                       # (9, L)

    # Channels-first lane layout (Cin, N*HW): wrapper-side layout plumbing so
    # the kernel's matmuls and output store are lane-dense.
    x_cl = x_nchw.reshape(N, Cin, HW).transpose(1, 0, 2).reshape(Cin, N * HW)

    rep = lambda shape: pl.BlockSpec(shape, lambda n: (0,) * len(shape))
    x_bytes = jnp.dtype(x_nchw.dtype).itemsize
    o_bytes = jnp.dtype(out_dtype).itemsize

    out_cl = pl.pallas_call(
        partial(bottleneck_kernel, W=W),
        out_shape=jax.ShapeDtypeStruct((Cout, N * HW), out_dtype),
        grid_spec=pltpu.PrefetchScalarGridSpec(
            num_scalar_prefetch=0,
            grid=grid,
            in_specs=[
                pl.BlockSpec((Cin, L), lambda n: (0, n)),  # x
                rep((P, Cin)),        # w1 (bf16, bn1 scale folded)
                rep((P, 1)),          # bn1 bias
                rep((P, 9 * P)),      # w2 (bf16, bn2 scale folded)
                rep((P, 1)),          # bn2 bias
                rep((Cout, P)),       # w3 (bf16, bn3 scale folded)
                rep((Cout, 1)),       # bn3 bias
                rep((9, L)),          # im2col boundary mask (per tap)
            ],
            out_specs=pl.BlockSpec((Cout, L), lambda n: (0, n)),
            scratch_shapes=[pltpu.VMEM((9 * P, L), jnp.bfloat16)],   # bf16 im2col
        ),
        compiler_params=pltpu.CompilerParams(
            dimension_semantics=("parallel",),
            vmem_limit_bytes=_vmem_limit_bytes(Cin, Cout, P, L, x_bytes, o_bytes)),
    )(x_cl, w1t, b1c, w2t, b2c, w3t, b3c, mask)

    return (out_cl.reshape(Cout, N, HW).transpose(1, 0, 2)
            .reshape(N, Cout, H, W))


def _fold_bn(gamma, beta, mean, var, eps=1e-5):
    scale = gamma / jnp.sqrt(var + eps)
    bias = beta - mean * scale
    return scale.reshape(1, -1), bias.reshape(1, -1)


def make_params(key, inplanes, planes):
    """Deterministic synthetic weights matching nn.Module shapes."""
    expansion = 4
    ks = jax.random.split(key, 15)
    # conv weights built directly in HWIO / (Cin, Cout) layouts.
    w1 = jax.random.normal(ks[0], (inplanes, planes), jnp.float32) * 0.1
    w2 = jax.random.normal(ks[1], (3, 3, planes, planes), jnp.float32) * 0.1
    w3 = jax.random.normal(ks[2], (planes, planes * expansion), jnp.float32) * 0.1

    def bn(kg, kb, km, kv, c):
        gamma = 1.0 + 0.1 * jax.random.normal(kg, (c,), jnp.float32)
        beta = 0.1 * jax.random.normal(kb, (c,), jnp.float32)
        mean = 0.05 * jax.random.normal(km, (c,), jnp.float32)
        var = jnp.abs(1.0 + 0.1 * jax.random.normal(kv, (c,), jnp.float32))
        return gamma, beta, mean, var

    g1, be1, m1, v1 = bn(ks[3], ks[4], ks[5], ks[6], planes)
    g2, be2, m2, v2 = bn(ks[7], ks[8], ks[9], ks[10], planes)
    g3, be3, m3, v3 = bn(ks[11], ks[12], ks[13], ks[14], planes * expansion)
    s1, b1 = _fold_bn(g1, be1, m1, v1)
    s2, b2 = _fold_bn(g2, be2, m2, v2)
    s3, b3 = _fold_bn(g3, be3, m3, v3)
    return (w1, s1, b1, w2, s2, b2, w3, s3, b3)


def reference_forward(x_nchw, params):
    """Pure-JAX reference (lax convs, f32) for correctness checking."""
    w1, s1, b1, w2, s2, b2, w3, s3, b3 = params
    x = jnp.transpose(x_nchw, (0, 2, 3, 1))              # NHWC
    dn = ("NHWC", "HWIO", "NHWC")
    conv = partial(jax.lax.conv_general_dilated, window_strides=(1, 1),
                   dimension_numbers=dn)
    o = conv(x, w1.reshape(1, 1, *w1.shape), padding="VALID")
    o = jnp.maximum(o * s1.reshape(1, 1, 1, -1) + b1.reshape(1, 1, 1, -1), 0.0)
    o = conv(o, w2, padding=((1, 1), (1, 1)))
    o = jnp.maximum(o * s2.reshape(1, 1, 1, -1) + b2.reshape(1, 1, 1, -1), 0.0)
    o = conv(o, w3.reshape(1, 1, *w3.shape), padding="VALID")
    o = o * s3.reshape(1, 1, 1, -1) + b3.reshape(1, 1, 1, -1)
    o = jnp.maximum(o + x, 0.0)
    return jnp.transpose(o, (0, 3, 1, 2))                # back to NCHW


if __name__ == "__main__":
    key = jax.random.PRNGKey(0)
    kx, kp = jax.random.split(key)

    N, H, W = 2, 16, 16
    planes = 4
    inplanes = planes * 4          # 16, so residual adds without downsample

    # PyTorch-style NCHW input; kernel consumes/produces NCHW directly.
    x_nchw = jax.random.normal(kx, (N, inplanes, H, W), jnp.float32)
    params = make_params(kp, inplanes, planes)

    out = jax.block_until_ready(jax.jit(bottleneck_forward)(x_nchw, params))
    ref = jax.block_until_ready(reference_forward(x_nchw, params))

    # bf16 matmul operands + bf16 output (f32 accumulation) => looser
    # tolerance vs the f32 lax reference.
    np.testing.assert_allclose(np.asarray(out.astype(jnp.float32)),
                               np.asarray(ref), rtol=2e-2, atol=2e-2)

    print("KERNEL_OK")
</pallas_src>

<mosaic_0001>
module attributes {stable_mosaic.version = 11 : i64} {
  func.func @bottleneck_kernel(%arg0: i32, %arg1: memref<16x256xf32, #tpu.memory_space<vmem>>, %arg2: memref<4x16xbf16, #tpu.memory_space<vmem>>, %arg3: memref<4x1xf32, #tpu.memory_space<vmem>>, %arg4: memref<4x36xbf16, #tpu.memory_space<vmem>>, %arg5: memref<4x1xf32, #tpu.memory_space<vmem>>, %arg6: memref<16x4xbf16, #tpu.memory_space<vmem>>, %arg7: memref<16x1xf32, #tpu.memory_space<vmem>>, %arg8: memref<9x256xf32, #tpu.memory_space<vmem>>, %arg9: memref<16x256xbf16, #tpu.memory_space<vmem>>, %arg10: memref<36x256xbf16, #tpu.memory_space<vmem>>) attributes {dimension_semantics = [#tpu.dimension_semantics<parallel>], iteration_bounds = array<i64: 2>, scalar_prefetch = 0 : i64, scratch_operands = 1 : i64, tpu.core_type = #tpu.core_type<tc>, window_params = [{transform_indices = @transform_0, window_bounds = array<i64: 16, 256>}, {pipeline_mode = #tpu.pipeline_mode<synchronous>, transform_indices = @transform_1, window_bounds = array<i64: 4, 16>}, {pipeline_mode = #tpu.pipeline_mode<synchronous>, transform_indices = @transform_2, window_bounds = array<i64: 4, 1>}, {pipeline_mode = #tpu.pipeline_mode<synchronous>, transform_indices = @transform_3, window_bounds = array<i64: 4, 36>}, {pipeline_mode = #tpu.pipeline_mode<synchronous>, transform_indices = @transform_4, window_bounds = array<i64: 4, 1>}, {pipeline_mode = #tpu.pipeline_mode<synchronous>, transform_indices = @transform_5, window_bounds = array<i64: 16, 4>}, {pipeline_mode = #tpu.pipeline_mode<synchronous>, transform_indices = @transform_6, window_bounds = array<i64: 16, 1>}, {pipeline_mode = #tpu.pipeline_mode<synchronous>, transform_indices = @transform_7, window_bounds = array<i64: 9, 256>}, {transform_indices = @transform_8, window_bounds = array<i64: 16, 256>}]} {
    %c0 = arith.constant 0 : index
    %c0_0 = arith.constant 0 : index
    %0 = vector.load %arg2[%c0, %c0_0] : memref<4x16xbf16, #tpu.memory_space<vmem>>, vector<4x16xbf16>
    %c0_1 = arith.constant 0 : index
    %c0_2 = arith.constant 0 : index
    %1 = vector.load %arg1[%c0_1, %c0_2] : memref<16x256xf32, #tpu.memory_space<vmem>>, vector<16x256xf32>
    %2 = arith.truncf %1 : vector<16x256xf32> to vector<16x256xbf16>
    %cst = arith.constant dense<0.000000e+00> : vector<4x256xf32>
    %3 = tpu.matmul %0, %2, %cst {dimension_numbers = #tpu.dot_dimension_numbers<[1], [0], [0], [1], [0, 0, 1, 1], [], []>} : vector<4x16xbf16>, vector<16x256xbf16>, vector<4x256xf32> -> vector<4x256xf32>
    %c0_3 = arith.constant 0 : index
    %c0_4 = arith.constant 0 : index
    %4 = vector.load %arg3[%c0_3, %c0_4] : memref<4x1xf32, #tpu.memory_space<vmem>>, vector<4x1xf32>
    %5 = vector.broadcast %4 : vector<4x1xf32> to vector<4x256xf32>
    %6 = arith.addf %3, %5 : vector<4x256xf32>
    %cst_5 = arith.constant 0.000000e+00 : f32
    %7 = vector.broadcast %cst_5 : f32 to vector<4x256xf32>
    %8 = arith.maximumf %6, %7 : vector<4x256xf32>
    %c17_i32 = arith.constant 17 : i32
    %9 = tpu.dynamic_rotate %8 by %c17_i32 dim 1 : vector<4x256xf32>, i32 -> vector<4x256xf32>
    %c0_6 = arith.constant 0 : index
    %c0_7 = arith.constant 0 : index
    %10 = vector.load %arg8[%c0_6, %c0_7] : memref<9x256xf32, #tpu.memory_space<vmem>>, vector<1x256xf32>
    %11 = vector.broadcast %10 : vector<1x256xf32> to vector<4x256xf32>
    %12 = arith.mulf %9, %11 : vector<4x256xf32>
    %13 = arith.truncf %12 : vector<4x256xf32> to vector<4x256xbf16>
    %c0_8 = arith.constant 0 : index
    %c0_9 = arith.constant 0 : index
    %14 = vector.load %arg10[%c0_8, %c0_9] : memref<36x256xbf16, #tpu.memory_space<vmem>>, vector<4x256xbf16>
    tpu.vector_store %arg10[%c0_8, %c0_9], %13 {strides = array<i32>} : memref<36x256xbf16, #tpu.memory_space<vmem>>, vector<4x256xbf16>,
    %c16_i32 = arith.constant 16 : i32
    %15 = tpu.dynamic_rotate %8 by %c16_i32 dim 1 : vector<4x256xf32>, i32 -> vector<4x256xf32>
    %c1 = arith.constant 1 : index
    %c0_10 = arith.constant 0 : index
    %16 = vector.load %arg8[%c1, %c0_10] : memref<9x256xf32, #tpu.memory_space<vmem>>, vector<1x256xf32>
    %17 = vector.broadcast %16 : vector<1x256xf32> to vector<4x256xf32>
    %18 = arith.mulf %15, %17 : vector<4x256xf32>
    %19 = arith.truncf %18 : vector<4x256xf32> to vector<4x256xbf16>
    %c4 = arith.constant 4 : index
    %c0_11 = arith.constant 0 : index
    %20 = vector.load %arg10[%c4, %c0_11] : memref<36x256xbf16, #tpu.memory_space<vmem>>, vector<4x256xbf16>
    tpu.vector_store %arg10[%c4, %c0_11], %19 {strides = array<i32>} : memref<36x256xbf16, #tpu.memory_space<vmem>>, vector<4x256xbf16>,
    %c15_i32 = arith.constant 15 : i32
    %21 = tpu.dynamic_rotate %8 by %c15_i32 dim 1 : vector<4x256xf32>, i32 -> vector<4x256xf32>
    %c2 = arith.constant 2 : index
    %c0_12 = arith.constant 0 : index
    %22 = vector.load %arg8[%c2, %c0_12] : memref<9x256xf32, #tpu.memory_space<vmem>>, vector<1x256xf32>
    %23 = vector.broadcast %22 : vector<1x256xf32> to vector<4x256xf32>
    %24 = arith.mulf %21, %23 : vector<4x256xf32>
    %25 = arith.truncf %24 : vector<4x256xf32> to vector<4x256xbf16>
    %c8 = arith.constant 8 : index
    %c0_13 = arith.constant 0 : index
    %26 = vector.load %arg10[%c8, %c0_13] : memref<36x256xbf16, #tpu.memory_space<vmem>>, vector<4x256xbf16>
    tpu.vector_store %arg10[%c8, %c0_13], %25 {strides = array<i32>} : memref<36x256xbf16, #tpu.memory_space<vmem>>, vector<4x256xbf16>,
    %c1_i32 = arith.constant 1 : i32
    %27 = tpu.dynamic_rotate %8 by %c1_i32 dim 1 : vector<4x256xf32>, i32 -> vector<4x256xf32>
    %c3 = arith.constant 3 : index
    %c0_14 = arith.constant 0 : index
    %28 = vector.load %arg8[%c3, %c0_14] : memref<9x256xf32, #tpu.memory_space<vmem>>, vector<1x256xf32>
    %29 = vector.broadcast %28 : vector<1x256xf32> to vector<4x256xf32>
    %30 = arith.mulf %27, %29 : vector<4x256xf32>
    %31 = arith.truncf %30 : vector<4x256xf32> to vector<4x256xbf16>
    %c12 = arith.constant 12 : index
    %c0_15 = arith.constant 0 : index
    %32 = vector.load %arg10[%c12, %c0_15] : memref<36x256xbf16, #tpu.memory_space<vmem>>, vector<4x256xbf16>
    tpu.vector_store %arg10[%c12, %c0_15], %31 {strides = array<i32>} : memref<36x256xbf16, #tpu.memory_space<vmem>>, vector<4x256xbf16>,
    %33 = arith.truncf %8 : vector<4x256xf32> to vector<4x256xbf16>
    %c16 = arith.constant 16 : index
    %c0_16 = arith.constant 0 : index
    %34 = vector.load %arg10[%c16, %c0_16] : memref<36x256xbf16, #tpu.memory_space<vmem>>, vector<4x256xbf16>
    tpu.vector_store %arg10[%c16, %c0_16], %33 {strides = array<i32>} : memref<36x256xbf16, #tpu.memory_space<vmem>>, vector<4x256xbf16>,
    %c255_i32 = arith.constant 255 : i32
    %35 = tpu.dynamic_rotate %8 by %c255_i32 dim 1 : vector<4x256xf32>, i32 -> vector<4x256xf32>
    %c5 = arith.constant 5 : index
    %c0_17 = arith.constant 0 : index
    %36 = vector.load %arg8[%c5, %c0_17] : memref<9x256xf32, #tpu.memory_space<vmem>>, vector<1x256xf32>
    %37 = vector.broadcast %36 : vector<1x256xf32> to vector<4x256xf32>
    %38 = arith.mulf %35, %37 : vector<4x256xf32>
    %39 = arith.truncf %38 : vector<4x256xf32> to vector<4x256xbf16>
    %c20 = arith.constant 20 : index
    %c0_18 = arith.constant 0 : index
    %40 = vector.load %arg10[%c20, %c0_18] : memref<36x256xbf16, #tpu.memory_space<vmem>>, vector<4x256xbf16>
    tpu.vector_store %arg10[%c20, %c0_18], %39 {strides = array<i32>} : memref<36x256xbf16, #tpu.memory_space<vmem>>, vector<4x256xbf16>,
    %c241_i32 = arith.constant 241 : i32
    %41 = tpu.dynamic_rotate %8 by %c241_i32 dim 1 : vector<4x256xf32>, i32 -> vector<4x256xf32>
    %c6 = arith.constant 6 : index
    %c0_19 = arith.constant 0 : index
    %42 = vector.load %arg8[%c6, %c0_19] : memref<9x256xf32, #tpu.memory_space<vmem>>, vector<1x256xf32>
    %43 = vector.broadcast %42 : vector<1x256xf32> to vector<4x256xf32>
    %44 = arith.mulf %41, %43 : vector<4x256xf32>
    %45 = arith.truncf %44 : vector<4x256xf32> to vector<4x256xbf16>
    %c24 = arith.constant 24 : index
    %c0_20 = arith.constant 0 : index
    %46 = vector.load %arg10[%c24, %c0_20] : memref<36x256xbf16, #tpu.memory_space<vmem>>, vector<4x256xbf16>
    tpu.vector_store %arg10[%c24, %c0_20], %45 {strides = array<i32>} : memref<36x256xbf16, #tpu.memory_space<vmem>>, vector<4x256xbf16>,
    %c240_i32 = arith.constant 240 : i32
    %47 = tpu.dynamic_rotate %8 by %c240_i32 dim 1 : vector<4x256xf32>, i32 -> vector<4x256xf32>
    %c7 = arith.constant 7 : index
    %c0_21 = arith.constant 0 : index
    %48 = vector.load %arg8[%c7, %c0_21] : memref<9x256xf32, #tpu.memory_space<vmem>>, vector<1x256xf32>
    %49 = vector.broadcast %48 : vector<1x256xf32> to vector<4x256xf32>
    %50 = arith.mulf %47, %49 : vector<4x256xf32>
    %51 = arith.truncf %50 : vector<4x256xf32> to vector<4x256xbf16>
    %c28 = arith.constant 28 : index
    %c0_22 = arith.constant 0 : index
    %52 = vector.load %arg10[%c28, %c0_22] : memref<36x256xbf16, #tpu.memory_space<vmem>>, vector<4x256xbf16>
    tpu.vector_store %arg10[%c28, %c0_22], %51 {strides = array<i32>} : memref<36x256xbf16, #tpu.memory_space<vmem>>, vector<4x256xbf16>,
    %c239_i32 = arith.constant 239 : i32
    %53 = tpu.dynamic_rotate %8 by %c239_i32 dim 1 : vector<4x256xf32>, i32 -> vector<4x256xf32>
    %c8_23 = arith.constant 8 : index
    %c0_24 = arith.constant 0 : index
    %54 = vector.load %arg8[%c8_23, %c0_24] : memref<9x256xf32, #tpu.memory_space<vmem>>, vector<1x256xf32>
    %55 = vector.broadcast %54 : vector<1x256xf32> to vector<4x256xf32>
    %56 = arith.mulf %53, %55 : vector<4x256xf32>
    %57 = arith.truncf %56 : vector<4x256xf32> to vector<4x256xbf16>
    %c32 = arith.constant 32 : index
    %c0_25 = arith.constant 0 : index
    %58 = vector.load %arg10[%c32, %c0_25] : memref<36x256xbf16, #tpu.memory_space<vmem>>, vector<4x256xbf16>
    tpu.vector_store %arg10[%c32, %c0_25], %57 {strides = array<i32>} : memref<36x256xbf16, #tpu.memory_space<vmem>>, vector<4x256xbf16>,
    %c0_26 = arith.constant 0 : index
    %c0_27 = arith.constant 0 : index
    %59 = vector.load %arg4[%c0_26, %c0_27] : memref<4x36xbf16, #tpu.memory_space<vmem>>, vector<4x36xbf16>
    %c0_28 = arith.constant 0 : index
    %c0_29 = arith.constant 0 : index
    %60 = vector.load %arg10[%c0_28, %c0_29] : memref<36x256xbf16, #tpu.memory_space<vmem>>, vector<36x256xbf16>
    %cst_30 = arith.constant dense<0.000000e+00> : vector<4x256xf32>
    %61 = tpu.matmul %59, %60, %cst_30 {dimension_numbers = #tpu.dot_dimension_numbers<[1], [0], [0], [1], [0, 0, 1, 1], [], []>} : vector<4x36xbf16>, vector<36x256xbf16>, vector<4x256xf32> -> vector<4x256xf32>
    %c0_31 = arith.constant 0 : index
    %c0_32 = arith.constant 0 : index
    %62 = vector.load %arg5[%c0_31, %c0_32] : memref<4x1xf32, #tpu.memory_space<vmem>>, vector<4x1xf32>
    %63 = vector.broadcast %62 : vector<4x1xf32> to vector<4x256xf32>
    %64 = arith.addf %61, %63 : vector<4x256xf32>
    %cst_33 = arith.constant 0.000000e+00 : f32
    %65 = vector.broadcast %cst_33 : f32 to vector<4x256xf32>
    %66 = arith.maximumf %64, %65 : vector<4x256xf32>
    %c0_34 = arith.constant 0 : index
    %c0_35 = arith.constant 0 : index
    %67 = vector.load %arg6[%c0_34, %c0_35] : memref<16x4xbf16, #tpu.memory_space<vmem>>, vector<16x4xbf16>
    %68 = arith.truncf %66 : vector<4x256xf32> to vector<4x256xbf16>
    %cst_36 = arith.constant dense<0.000000e+00> : vector<16x256xf32>
    %69 = tpu.matmul %67, %68, %cst_36 {dimension_numbers = #tpu.dot_dimension_numbers<[1], [0], [0], [1], [0, 0, 1, 1], [], []>} : vector<16x4xbf16>, vector<4x256xbf16>, vector<16x256xf32> -> vector<16x256xf32>
    %c0_37 = arith.constant 0 : index
    %c0_38 = arith.constant 0 : index
    %70 = vector.load %arg7[%c0_37, %c0_38] : memref<16x1xf32, #tpu.memory_space<vmem>>, vector<16x1xf32>
    %71 = vector.broadcast %70 : vector<16x1xf32> to vector<16x256xf32>
    %72 = arith.addf %69, %71 : vector<16x256xf32>
    %c0_39 = arith.constant 0 : index
    %c0_40 = arith.constant 0 : index
    %73 = vector.load %arg1[%c0_39, %c0_40] : memref<16x256xf32, #tpu.memory_space<vmem>>, vector<16x256xf32>
    %74 = arith.addf %72, %73 : vector<16x256xf32>
    %cst_41 = arith.constant 0.000000e+00 : f32
    %75 = vector.broadcast %cst_41 : f32 to vector<16x256xf32>
    %76 = arith.maximumf %74, %75 : vector<16x256xf32>
    %77 = arith.truncf %76 : vector<16x256xf32> to vector<16x256xbf16>
    %c0_42 = arith.constant 0 : index
    %c0_43 = arith.constant 0 : index
    %78 = vector.load %arg9[%c0_42, %c0_43] : memref<16x256xbf16, #tpu.memory_space<vmem>>, vector<16x256xbf16>
    tpu.vector_store %arg9[%c0_42, %c0_43], %77 {strides = array<i32>} : memref<16x256xbf16, #tpu.memory_space<vmem>>, vector<16x256xbf16>,
    return
  }
  func.func @transform_0(%arg0: i32) -> (i32, i32) {
    %c0_i32 = arith.constant 0 : i32
    %c0_i32_0 = arith.constant 0 : i32
    return %c0_i32, %arg0 : i32, i32
  }
  func.func @transform_1(%arg0: i32) -> (i32, i32) {
    %c0_i32 = arith.constant 0 : i32
    %c0_i32_0 = arith.constant 0 : i32
    %c0_i32_1 = arith.constant 0 : i32
    return %c0_i32, %c0_i32_0 : i32, i32
  }
  func.func @transform_2(%arg0: i32) -> (i32, i32) {
    %c0_i32 = arith.constant 0 : i32
    %c0_i32_0 = arith.constant 0 : i32
    %c0_i32_1 = arith.constant 0 : i32
    return %c0_i32, %c0_i32_0 : i32, i32
  }
  func.func @transform_3(%arg0: i32) -> (i32, i32) {
    %c0_i32 = arith.constant 0 : i32
    %c0_i32_0 = arith.constant 0 : i32
    %c0_i32_1 = arith.constant 0 : i32
    return %c0_i32, %c0_i32_0 : i32, i32
  }
  func.func @transform_4(%arg0: i32) -> (i32, i32) {
    %c0_i32 = arith.constant 0 : i32
    %c0_i32_0 = arith.constant 0 : i32
    %c0_i32_1 = arith.constant 0 : i32
    return %c0_i32, %c0_i32_0 : i32, i32
  }
  func.func @transform_5(%arg0: i32) -> (i32, i32) {
    %c0_i32 = arith.constant 0 : i32
    %c0_i32_0 = arith.constant 0 : i32
    %c0_i32_1 = arith.constant 0 : i32
    return %c0_i32, %c0_i32_0 : i32, i32
  }
  func.func @transform_6(%arg0: i32) -> (i32, i32) {
    %c0_i32 = arith.constant 0 : i32
    %c0_i32_0 = arith.constant 0 : i32
    %c0_i32_1 = arith.constant 0 : i32
    return %c0_i32, %c0_i32_0 : i32, i32
  }
  func.func @transform_7(%arg0: i32) -> (i32, i32) {
    %c0_i32 = arith.constant 0 : i32
    %c0_i32_0 = arith.constant 0 : i32
    %c0_i32_1 = arith.constant 0 : i32
    return %c0_i32, %c0_i32_0 : i32, i32
  }
  func.func @transform_8(%arg0: i32) -> (i32, i32) {
    %c0_i32 = arith.constant 0 : i32
    %c0_i32_0 = arith.constant 0 : i32
    return %c0_i32, %arg0 : i32, i32
  }
}

</mosaic_0001>

<bundles_post_ra>
// kernel: bottleneck_forward.1
= control target key start
LH: loop header
LB: loop body
LE: loop exit
PB: predicated region body
PF: predicated region fallthrough
CT: control target
= control target key end

     0   :  { %s1125_s27 = smov 0   ;;  %s1127_s28 = smov 0   ;;  %s1296_s0 = inlined_call_operand.vmem [shape: f32[16,512], index: 0, kind: input, shape index: {}]   ;;  %s1297_s1 = inlined_call_operand.vmem [shape: bf16[4,16], index: 1, kind: input, shape index: {}]   ;;  %s1298_s2 = inlined_call_operand.vmem [shape: f32[4,1], index: 2, kind: input, shape index: {}]   ;;  %s1299_s3 = inlined_call_operand.vmem [shape: bf16[4,36], index: 3, kind: input, shape index: {}]   ;;  %s1300_s4 = inlined_call_operand.vmem [shape: f32[4,1], index: 4, kind: input, shape index: {}]   ;;  %s1301_s5 = inlined_call_operand.vmem [shape: bf16[16,4], index: 5, kind: input, shape index: {}]   ;;  %s1302_s6 = inlined_call_operand.vmem [shape: f32[16,1], index: 6, kind: input, shape index: {}]   ;;  %s1303_s7 = inlined_call_operand.vmem [shape: f32[9,256], index: 7, kind: input, shape index: {}]   ;;  %s1304_s8 = inlined_call_operand.vmem [shape: bf16[16,512], index: 8, kind: output, shape index: {}]  }
   0x1   :  { %s1129_s29 = smov 0  }
   0x2 LB: > { %s945_s30 = sadd.s32 4294967295, %s1069_s29   ;;  %s1142_s9 = sadd.s32 1, %s1069_s29   ;;  %s1069_s29 = sphi %s1129_s29, %s1308_s29   ;;  %s1065_s28 = sphi %s1127_s28, %s1307_s28   ;;  %s1061_s27 = sphi %s1125_s27, %s1306_s27  }
   0x3   : > { %s22_s10 = ssub.s32 %s1069_s29, %s1142_s9  ;;  %s25_s11 = sadd.s32 1, %s1065_s28 }
   0x4   : > { %p23_p0 = scmp.eq.s32.totalorder %s22_s10, 0  ;;  %p32_p1 = scmp.ne.s32.totalorder %s1065_s28, %s1061_s27 }
   0x5   : > { %p33_p2 = scmp.eq.s32.totalorder %s1069_s29, 0  ;;  %p209_p3 = scmp.eq.s32.totalorder %s945_s30, 1 }
   0x6   : > { %s1153_s12 = scalar_select %p23_p0, %s1065_s28, %s25_s11  }
   0x7   : > { %p34_p4 = por %p33_p2, %p32_p1  ;;  %p1155_p5 = por %p209_p3, %p32_p1 }
   0x8   : > { %p948_p6 = scmp.ge.s32.totalorder %s1069_s29, 2 }
   0xa   : > { %252 = sbr.rel (%p948_p6) target bundleno = 21 (0x15), region = 44 }
   0xf   : > { %255 = sbr.rel (!%p34_p4) target bundleno = 21 (0x15), region = 48  ;;  %s257_s14 = sand.u32 (%p34_p4), 1, %s1065_s28  }
  0x10   : > { %s990_s15 = sshll.u32 (%p34_p4), %s1069_s29, 4  ;;  %s949_s16 = sshll.u32 (%p34_p4), %s257_s14, 5 }
  0x11   : > { %s262_s19 = scalar_lea.vmem (%p34_p4), %s1296_s0, %s990_s15  ;;  %s259_s20 = scalar_lea.vmem (%p34_p4), [#allocation3], %s949_s16 }
  0x12   : > { %v275_v0 = vld [vmem:[%s262_s19] sm:$0xff] (%p34_p4)  ;;  %v277_v1 = vld [vmem:[%s262_s19 + $0x8] sm:$0xff] (%p34_p4) }
  0x13   : > { %v279_v2 = vld [vmem:[%s262_s19 + $0x20] sm:$0xff] (%p34_p4)  ;;  %276 = vst [vmem:[%s259_s20] sm:$0xff] (%p34_p4), %v275_v0  ;;  %278 = vst [vmem:[%s259_s20 + $0x8] sm:$0xff] (%p34_p4), %v277_v1  ;;  %v281_v3 = vld [vmem:[%s262_s19 + $0x28] sm:$0xff] (%p34_p4) }
  0x14   : > { %280 = vst [vmem:[%s259_s20 + $0x10] sm:$0xff] %v279_v2  ;;  %282 = vst [vmem:[%s259_s20 + $0x18] sm:$0xff] %v281_v3 }
  0x15 PF: > { %p952_p7 = scmp.ge.s32.totalorder %s1069_s29, 1  ;;  %p287_p8 = scmp.lt.s32.totalorder %s1069_s29, 3 }
  0x17   : > { %p288_p9 = pnand %p952_p7, %p287_p8 }
  0x18   : > { %s294_s21 = sand.u32 (!%p288_p9), 1, %s1061_s27   ;;  %s1072_s11 = smov (!%p288_p9), 127  }
  0x19   : > { %291 = sbr.rel (%p288_p9) target bundleno = 818 (0x332), region = 71  ;;  %s953_s22 = sshll.u32 (!%p288_p9), %s294_s21, 5 }
  0x1a   : > { %s296_s25 = scalar_lea.vmem (!%p288_p9), [#allocation3], %s953_s22  ;;  %s1073_s14 = smov (!%p288_p9), 111  }
  0x1b   : > { %s1074_s15 = smov (!%p288_p9), 112   ;;  %s1075_s16 = smov (!%p288_p9), 113  }
  0x1c   : > { %s1076_s17 = smov (!%p288_p9), 16   ;;  %s1077_s18 = smov (!%p288_p9), 1  }
  0x1d   : > { %s1078_s19 = smov (!%p288_p9), 17   ;;  %s1079_s20 = smov (!%p288_p9), 15  }
  0x1e   : > { %v1071_v4 = vmov 0   ;;  %v336_v5 = vld [vmem:[%s1298_s2] sm:$0xf]  ;;  %v1173_v6 = vld [vmem:[%s296_s25 + $0x8] sm:$0xff]  ;;  %v1177_v8 = vld [vmem:[%s296_s25] sm:$0xff]  ;;  %vm342_vm0 = vcmask 130048   ;;  %v393_v26 = vlaneseq }
  0x1f   : > { %378 = vmatprep.mubr.bf16.mxu0 %v1071_v4  ;;  %1036 = vset.pattern.permute.xlu0 %v1071_v4  ;;  %v1175_v7 = vld [vmem:[%s296_s25 + $0x18] sm:$0xff]  ;;  %v1181_v10 = vld [vmem:[%s296_s25 + $0x10] sm:$0xff]  ;;  %v747_v25 = vld [vmem:[%s1302_s6 + $0x8] sm:$0xff]  ;;  %vm692_vm9 = vcmask 1041408   ;;  %vm688_vm10 = vcmask 293888   ;;  %vm763_vm11 = vcmask 31744  }
  0x20   : > { %339 = vperm.xlu0 %1036, %v336_v5   ;;  %731 = vmatprep.mubr.bf16.mxu1 %v1071_v4  ;;  %v335_v9 = vpack.c.bf16 %v1175_v7, %v1173_v6  ;;  %v334_v11 = vpack.c.bf16 %v1181_v10, %v1177_v8  ;;  %v329_v12 = vld [vmem:[%s1297_s1] sm:$0x3]  ;;  %v401_v27 = vshrl.u32 %v393_v26, 7  ;;  %v1197_v28 = vand.u32 127, %v393_v26  ;;  %s1002_s27 = sshll.u32 (%p1155_p5), %s945_s30, 3 }
  0x21   : > { %1037 = vset.pattern.permute.xlu1 %v1071_v4  ;;  %v746_v23 = vld [vmem:[%s1302_s6] sm:$0xff]  ;;  %v970_v3 = vld [vmem:[%s1303_s7 + $0x10] ss:$8 sm:$0x3]  ;;  %s851_s23 = scalar_lea.vmem (%p1155_p5), %s1304_s8, %s1002_s27 }
  0x22   : > { %360 = vmatprep.subr.bf16.mxu0 %v335_v9  ;;  %v657_v24 = vld [vmem:[%s1300_s4] sm:$0xf]  ;;  %v1199_v29 = vsub.s32 0, %v401_v27  ;;  %v1201_v30 = vsub.s32 1, %v401_v27  ;;  %vm529_vm1 = vcmp.lt.s32.totalorder %v1197_v28, 127  ;;  %vm592_vm2 = vcmp.lt.s32.totalorder %v1197_v28, 112 }
  0x23   : > { %361 = vmatpush1.bf16.msra.mxu0 %v334_v11  ;;  %v964_v31 = vld [vmem:[%s1303_s7 + $0x5] ss:$8 sm:$0x3]  ;;  %v968_v36 = vld [vmem:[%s1303_s7 + $0x7] ss:$8 sm:$0x3] }
  0x24   : > { %v538_v34 = vrot.slane %v964_v31, %v1199_v29  ;;  %v542_v35 = vrot.slane %v964_v31, %v1201_v30  ;;  %v601_v43 = vrot.slane %v968_v36, %v1199_v29  ;;  %v605_v44 = vrot.slane %v968_v36, %v1201_v30  ;;  %v966_v45 = vld [vmem:[%s1303_s7 + $0x6] ss:$8 sm:$0x3]  ;;  %v957_v56 = vld [vmem:[%s1303_s7 + $0x1] ss:$8 sm:$0x3] }
  0x25   : > { %vm561_vm3 = vcmp.lt.s32.totalorder %v1197_v28, 113  ;;  %v570_v51 = vrot.slane %v966_v45, %v1199_v29  ;;  %v574_v55 = vrot.slane %v966_v45, %v1201_v30  ;;  %vm425_vm4 = vcmp.lt.s32.totalorder %v1197_v28, 16 }
  0x26   : > { %955 = vmatmul.mubr.msk.bf16.vlgmr.msra.gmra.mxu0 %vm342_vm0, %v329_v12  ;;  %v434_v62 = vrot.slane %v957_v56, %v1199_v29  ;;  %v438_v2 = vrot.slane %v957_v56, %v1201_v30  ;;  %vm624_vm5 = vcmp.lt.s32.totalorder %v1197_v28, 111  ;;  %vm488_vm6 = vcmp.lt.s32.totalorder %v1197_v28, 1 }
  0x27   : > { %805 = vmatprep.mubr.bf16.mxu0 %v1071_v4  ;;  %v961_v4 = vld [vmem:[%s1303_s7 + $0x3] ss:$8 sm:$0x3]  ;;  %vm395_vm7 = vcmp.lt.s32.totalorder %v1197_v28, 17  ;;  %vm457_vm8 = vcmp.lt.s32.totalorder %v1197_v28, 15 }
  0x9b   : > { %v340_v13 = vpop.permute.xlu0 %339 }
  0xe6   : > { %v380_v14 = vpop.f32.mrf.mxu0 }
  0xe7   : > { %v381_v15 = vadd.f32 %v380_v14, %v340_v13  ;;  %v633_v14 = vrot.slane %v970_v3, %v1199_v29 }
  0xe8   : > { %v382_v16 = vpop.f32.mrf.mxu0 }
  0xe9   : > { %v387_v17 = vmax.f32 %v381_v15, 0.0  ;;  %v383_v18 = vadd.f32 %v382_v16, %v340_v13  ;;  %v637_v15 = vrot.slane %v970_v3, %v1201_v30  ;;  %v398_v16 = vld [vmem:[%s1303_s7] ss:$8 sm:$0x3] }
  0xea   : > { %v384_v19 = vpop.f32.mrf.mxu0 }
  0xeb   : > { %v388_v20 = vmax.f32 %v383_v18, 0.0  ;;  %525 = vrot.lane.b32.xlu1 %v387_v17, %s1072_s11  ;;  %620 = vrot.lane.b32.xlu0 %v387_v17, %s1073_s14  ;;  %v497_v19 = vrot.slane %v961_v4, %v1199_v29 }
  0xec   : > { %v385_v21 = vpop.f32.mrf.mxu0 }
  0xed   : > { %v995_v22 = vpack.c.bf16 %v388_v20, %v387_v17 }
  0xef   : > { %588 = vrot.lane.b32.xlu1 %v387_v17, %s1074_s15  ;;  %527 = vrot.lane.b32.xlu0 %v388_v20, %s1072_s11  ;;  %524 = vst [vmem:[#allocation2 + $0x20] sm:$0x33] %v995_v22 }
  0xf3   : > { %557 = vrot.lane.b32.xlu1 %v387_v17, %s1075_s16  ;;  %590 = vrot.lane.b32.xlu0 %v388_v20, %s1074_s15 }
  0xf7   : > { %421 = vrot.lane.b32.xlu1 %v387_v17, %s1076_s17  ;;  %559 = vrot.lane.b32.xlu0 %v388_v20, %s1075_s16 }
  0xfb   : > { %484 = vrot.lane.b32.xlu1 %v387_v17, %s1077_s18  ;;  %423 = vrot.lane.b32.xlu0 %v388_v20, %s1076_s17 }
  0xff   : > { %622 = vrot.lane.b32.xlu1 %v388_v20, %s1073_s14  ;;  %486 = vrot.lane.b32.xlu0 %v388_v20, %s1077_s18 }
 0x103   : > { %389 = vrot.lane.b32.xlu1 %v387_v17, %s1078_s19  ;;  %391 = vrot.lane.b32.xlu0 %v388_v20, %s1078_s19  ;;  %s954_s19 = sshll.u32 %s294_s21, 4 }
 0x107   : > { %453 = vrot.lane.b32.xlu1 %v387_v17, %s1079_s20  ;;  %455 = vrot.lane.b32.xlu0 %v388_v20, %s1079_s20  ;;  %v501_v20 = vrot.slane %v961_v4, %v1201_v30  ;;  %s325_s20 = scalar_lea.vmem [#allocation4], %s954_s19 }
 0x10b   : > { %750 = vperm.xlu0 %1036, %v746_v23   ;;  %660 = vperm.xlu1 %1037, %v657_v24   ;;  %v403_v24 = vrot.slane %v398_v16, %v1199_v29 }
 0x10f   : > { %755 = vperm.xlu1 %1037, %v747_v25   ;;  %v407_v25 = vrot.slane %v398_v16, %v1201_v30  ;;  %v1046_v16 = vld [vmem:[%s1301_s5] sm:$0xff]  }
 0x15d   : > { %v526_v32 = vpop.permute.xlu1 %525  ;;  %v1206_v33 = vpop.permute.xlu0 %620 }
 0x161   : > { %v589_v37 = vpop.permute.xlu1 %588  ;;  %v528_v38 = vpop.permute.xlu0 %527 }
 0x162   : > { %v530_v39 = vsel %vm529_vm1, %v526_v32, %v528_v38  ;;  %v531_v40 = vsel %vm529_vm1, %v528_v38, %v526_v32 }
 0x163   : > { %v545_v41 = vmul.f32 %v538_v34, %v530_v39  ;;  %v546_v42 = vmul.f32 %v542_v35, %v531_v40  ;;  %v959_v39 = vld [vmem:[%s1303_s7 + $0x2] ss:$8 sm:$0x3] }
 0x165   : > { %v996_v46 = vpack.c.bf16 %v546_v42, %v545_v41  ;;  %v558_v47 = vpop.permute.xlu1 %557  ;;  %v591_v48 = vpop.permute.xlu0 %590 }
 0x166   : > { %v593_v49 = vsel %vm592_vm2, %v589_v37, %v591_v48  ;;  %v594_v50 = vsel %vm592_vm2, %v591_v48, %v589_v37  ;;  %v470_v48 = vrot.slane %v959_v39, %v1201_v30 }
 0x167   : > { %v554_v52 = vrot.slane %v996_v46, 6  ;;  %v608_v53 = vmul.f32 %v601_v43, %v593_v49  ;;  %v609_v54 = vmul.f32 %v605_v44, %v594_v50 }
 0x169   : > { %556 = vst [vmem:[#allocation2 + $0x20] sm:$0xcc] %v554_v52  ;;  %v998_v57 = vpack.c.bf16 %v609_v54, %v608_v53  ;;  %v422_v58 = vpop.permute.xlu1 %421  ;;  %v560_v59 = vpop.permute.xlu0 %559 }
 0x16a   : > { %v562_v60 = vsel %vm561_vm3, %v558_v47, %v560_v59  ;;  %v563_v61 = vsel %vm561_vm3, %v560_v59, %v558_v47  ;;  %v466_v47 = vrot.slane %v959_v39, %v1199_v29 }
 0x16b   : > { %v617_v63 = vrot.slane %v998_v57, 6  ;;  %v577_v0 = vmul.f32 %v570_v51, %v562_v60  ;;  %v578_v1 = vmul.f32 %v574_v55, %v563_v61 }
 0x16d   : > { %619 = vst [vmem:[#allocation2 + $0x10] sm:$0xcc] %v617_v63  ;;  %v997_v5 = vpack.c.bf16 %v578_v1, %v577_v0  ;;  %v485_v9 = vpop.permute.xlu1 %484  ;;  %v424_v11 = vpop.permute.xlu0 %423  ;;  %v651_v63 = vld [vmem:[%s1299_s3] sm:$0x3] }
 0x16e   : > { %v426_v12 = vsel %vm425_vm4, %v422_v58, %v424_v11  ;;  %v427_v13 = vsel %vm425_vm4, %v424_v11, %v422_v58 }
 0x16f   : > { %587 = vst [vmem:[#allocation2 + $0x10] sm:$0x33] %v997_v5  ;;  %v441_v17 = vmul.f32 %v434_v62, %v427_v13  ;;  %v442_v18 = vmul.f32 %v438_v2, %v426_v12 }
 0x171   : > { %v992_v21 = vpack.c.bf16 %v442_v18, %v441_v17  ;;  %v623_v22 = vpop.permute.xlu1 %622  ;;  %v487_v23 = vpop.permute.xlu0 %486 }
 0x172   : > { %v625_v26 = vsel %vm624_vm5, %v1206_v33, %v623_v22  ;;  %v626_v27 = vsel %vm624_vm5, %v623_v22, %v1206_v33  ;;  %v489_v31 = vsel %vm488_vm6, %v485_v9, %v487_v23  ;;  %v490_v32 = vsel %vm488_vm6, %v487_v23, %v485_v9 }
 0x173   : > { %v450_v34 = vrot.slane %v992_v21, 6  ;;  %v640_v35 = vmul.f32 %v633_v14, %v625_v26  ;;  %v641_v36 = vmul.f32 %v637_v15, %v626_v27  ;;  %v504_v37 = vmul.f32 %v497_v19, %v490_v32 }
 0x174   : > { %v505_v38 = vmul.f32 %v501_v20, %v489_v31 }
 0x175   : > { %452 = vst [vmem:[#allocation2 + $0x8] sm:$0xcc] %v450_v34  ;;  %v999_v40 = vpack.c.bf16 %v641_v36, %v640_v35  ;;  %v390_v41 = vpop.permute.xlu1 %389  ;;  %v392_v42 = vpop.permute.xlu0 %391 }
 0x176   : > { %v994_v43 = vpack.c.bf16 %v505_v38, %v504_v37  ;;  %v396_v44 = vsel %vm395_vm7, %v390_v41, %v392_v42  ;;  %v397_v33 = vsel %vm395_vm7, %v392_v42, %v390_v41  ;;  %v1040_v30 = vld [vmem:[#allocation2 + $0x24] ss:$-16 sps:$4 sm:$0xff]   ;;  %v1042_v60 = vld [vmem:[#allocation2 + $0x20] ss:$-16 sps:$4 sm:$0xff]  }
 0x177   : > { %650 = vst [vmem:[#allocation2 + $0x18] sm:$0x33] %v999_v40  ;;  %v410_v45 = vmul.f32 %v403_v24, %v397_v33  ;;  %v411_v46 = vmul.f32 %v407_v25, %v396_v44 }
 0x178   : > { %v513_v49 = vrot.slane %v994_v43, 6 }
 0x179   : > { %v991_v50 = vpack.c.bf16 %v411_v46, %v410_v45  ;;  %v454_v51 = vpop.permute.xlu1 %453  ;;  %v456_v52 = vpop.permute.xlu0 %455 }
 0x17a   : > { %515 = vst [vmem:[#allocation2] sm:$0xcc] %v513_v49  ;;  %v458_v53 = vsel %vm457_vm8, %v454_v51, %v456_v52  ;;  %v459_v54 = vsel %vm457_vm8, %v456_v52, %v454_v51 }
 0x17b   : > { %420 = vst [vmem:[#allocation2 + $0x8] sm:$0x33] %v991_v50  ;;  %v473_v55 = vmul.f32 %v466_v47, %v459_v54  ;;  %v474_v56 = vmul.f32 %v470_v48, %v458_v53 }
 0x17d   : > { %v993_v57 = vpack.c.bf16 %v474_v56, %v473_v55 }
 0x17e   : > { %v656_v58 = vld [vmem:[#allocation2 + $0x18] sm:$0x33] }
 0x17f   : > { %483 = vst [vmem:[#allocation2] sm:$0x33] %v993_v57  ;;  %v977_v28 = vcombine.high %v656_v58, %v656_v58  ;;  %v976_v59 = vcombine.low %v656_v58, %v656_v58 }
 0x181   : > { %978 = vmatprep.subr.msk.bf16.mxu1 %vm692_vm9, %v977_v28  ;;  %v694_v29 = vsel %vm692_vm9, %v976_v59, 0 }
 0x182   : > { %710 = vmatpush1.bf16.msra.mxu1 %v694_v29 }
 0x183   : > { %711 = vmatprep.subr.bf16.mxu1 %v1040_v30 }
 0x186   : > { %712 = vmatpush1.bf16.msra.mxu1 %v1042_v60  ;;  %v1043_v61 = vld [vmem:[#allocation2 + $0xc] ss:$-8 sps:$4 sm:$0xff]   ;;  %v1045_v62 = vld [vmem:[#allocation2 + $0x8] ss:$-8 sps:$4 sm:$0xff]   ;;  %v661_v0 = vpop.permute.xlu1 %660  ;;  %v751_v17 = vpop.permute.xlu0 %750 }
 0x187   : > { %713 = vmatprep.subr.bf16.mxu1 %v1043_v61 }
 0x18a   : > { %714 = vmatpush1.bf16.msra.mxu1 %v1045_v62  ;;  %v756_v23 = vpop.permute.xlu1 %755 }
 0x18d   : > { %979 = vmatmul.mubr.msk.bf16.vlgmr.msra.gmra.mxu1 %vm688_vm10, %v651_v63 }
 0x24d   : > { %v733_v1 = vpop.f32.mrf.mxu1 }
 0x24e   : > { %v734_v2 = vadd.f32 %v733_v1, %v661_v0 }
 0x24f   : > { %v735_v3 = vpop.f32.mrf.mxu1 }
 0x250   : > { %v740_v4 = vmax.f32 %v734_v2, 0.0  ;;  %v736_v5 = vadd.f32 %v735_v3, %v661_v0 }
 0x251   : > { %v737_v9 = vpop.f32.mrf.mxu1 }
 0x252   : > { %v744_v11 = vpack.c.bf16 %v740_v4, %v740_v4  ;;  %v741_v12 = vmax.f32 %v736_v5, 0.0 }
 0x253   : > { %v738_v13 = vpop.f32.mrf.mxu1 }
 0x254   : > { %v745_v14 = vpack.c.bf16 %v741_v12, %v741_v12  ;;  %v768_v15 = vsel %vm692_vm9, %v744_v11, 0 }
 0x256   : > { %981 = vmatprep.subr.msk.bf16.mxu0 %vm692_vm9, %v745_v14 }
 0x257   : > { %788 = vmatpush1.bf16.msra.mxu0 %v768_v15 }
 0x25a   : > { %982 = vmatmul.mubr.msk.bf16.vlgmr.msra.gmra.mxu0 %vm763_vm11, %v1046_v16 }
 0x31a   : > { %v807_v18 = vpop.f32.mrf.mxu0 }
 0x31b   : > { %v808_v19 = vadd.f32 %v807_v18, %v751_v17 }
 0x31c   : > { %v809_v20 = vpop.f32.mrf.mxu0 }
 0x31d   : > { %v820_v21 = vadd.f32 %v808_v19, %v1177_v8  ;;  %v810_v22 = vadd.f32 %v809_v20, %v751_v17 }
 0x31e   : > { %v811_v24 = vpop.f32.mrf.mxu0 }
 0x31f   : > { %v821_v25 = vadd.f32 %v810_v22, %v1173_v6  ;;  %v812_v26 = vadd.f32 %v811_v24, %v756_v23  ;;  %v824_v31 = vmax.f32 %v820_v21, 0.0 }
 0x320   : > { %v813_v27 = vpop.f32.mrf.mxu0 }
 0x321   : > { %v825_v32 = vmax.f32 %v821_v25, 0.0  ;;  %v822_v34 = vadd.f32 %v812_v26, %v1181_v10  ;;  %v814_v35 = vadd.f32 %v813_v27, %v756_v23 }
 0x323   : > { %v1000_v36 = vpack.c.bf16 %v825_v32, %v824_v31  ;;  %v823_v37 = vadd.f32 %v814_v35, %v1175_v7  ;;  %v826_v8 = vmax.f32 %v822_v34, 0.0 }
 0x325   : > { %840 = vst [vmem:[%s325_s20] sm:$0xff] %v1000_v36  ;;  %v827_v38 = vmax.f32 %v823_v37, 0.0  ;;  %848 = sbr.rel (!%p1155_p5) target bundleno = 818 (0x332), region = 79 }
 0x327   : > { %v1001_v39 = vpack.c.bf16 %v827_v38, %v826_v8 }
 0x329   : > { %841 = vst [vmem:[%s325_s20 + $0x8] sm:$0xff] %v1001_v39 }
 0x32c   : > { %v882_v6 = vld [vmem:[%s325_s20] sm:$0xff] }
 0x32d   : > { %883 = vst [vmem:[%s851_s23] sm:$0xff] %v882_v6 }
 0x330   : > { %v884_v40 = vld [vmem:[%s325_s20 + $0x8] sm:$0xff] }
 0x331   : > { %885 = vst [vmem:[%s851_s23 + $0x10] sm:$0xff] %v884_v40 }
 0x332 PF: > { %p15_p10 = scmp.ge.s32.totalorder %s1142_s9, 4   ;;  %s1306_s27 = smov %s1065_s28 }
 0x333   : > { %s1307_s28 = smov %s1153_s12  ;;  %s1308_s29 = smov %s1142_s9 }
 0x334   :  { %17 = sbr.rel (!%p15_p10) target bundleno = 2 (0x2), region = 155 }

</bundles_post_ra>
